<compile_context>
chip_gen: v6e
topology: v6e:2x2x1
jax: 0.10.0
libtpu: 0.0.40
codegen_flags: <defaults>
</compile_context>

<pallas_src>
import jax
import jax.numpy as jnp
from jax.experimental import pallas as pl
from jax.experimental.pallas import tpu as pltpu


# ---------------------------------------------------------------------------
# Kernels  (x block: (bb, T, ct); output block: lane-dense 2-D (bb, ct))
# ---------------------------------------------------------------------------
def _masked_avg_kernel(x_ref, w_ref, o_ref):
    # w_ref is (bb, T, 1): mask and 1/count folded into one weight in the
    # wrapper -> single broadcasted multiply, layout-matched to x (T on
    # sublanes), no separate reciprocal input and no per-step relayout.
    x = x_ref[...].astype(jnp.float32)
    o_ref[...] = jnp.sum(x * w_ref[...], axis=1).astype(o_ref.dtype)


def _avg_kernel(x_ref, o_ref):
    x = x_ref[...].astype(jnp.float32)
    inv_t = jnp.float32(1.0 / x_ref.shape[1])      # static: multiply, not divide
    o_ref[...] = (jnp.sum(x, axis=1) * inv_t).astype(o_ref.dtype)


def _max_kernel(x_ref, o_ref):
    o_ref[...] = jnp.max(x_ref[...], axis=1).astype(o_ref.dtype)


# ---------------------------------------------------------------------------
# Sizing helpers
# ---------------------------------------------------------------------------
_TARGET_TILE_BYTES = 3 * 1024 * 1024   # ~2-4 MiB x-tiles: HBM-roofline sweet spot
_SMALL_BYTES = 1024 * 1024             # below ~1 MiB a fused XLA reduction wins


def _tpu_info():
    """Return (vmem_capacity_bytes, tensorcores_per_chip) with safe fallbacks."""
    vmem = None
    cores = 1
    try:
        vmem = int(pltpu.get_tpu_info().vmem_capacity_bytes)
    except Exception:
        vmem = None
    try:
        kind = jax.devices()[0].device_kind.lower()
    except Exception:
        kind = ""
    if "7" in kind:                      # v7x: 2 TensorCores / chip, 64 MiB VMEM / TC
        cores = 2
        if vmem is None:
            vmem = 64 << 20
    if vmem is None:                     # v5e / v6e: 1 TC, 128 MiB VMEM
        vmem = 128 << 20 if ("v5" in kind or "v6" in kind) else 64 << 20
    return vmem, cores


def _choose_tiles(B, T, C, itemsize, num_tc):
    """Pick (bb, ct, Bp): batch/channel tile sizes and padded batch extent."""
    sub = max(8, 32 // itemsize)         # sublane group: 8 f32 / 16 bf16 / 32 int8

    # ---- channel tile ------------------------------------------------------
    # Split C only when lane-aligned and large; unaligned class counts keep the
    # (always layout-legal) full extent and avoid a pad copy of x.
    ct = C
    if C % 128 == 0 and C >= 1024:
        for cand in (2048, 1024, 512, 256, 128):
            if cand <= C and C % cand == 0:
                ct = cand
                break

    # ---- batch tile ----------------------------------------------------------
    row_bytes = max(1, T * ct * itemsize)
    rows = max(sub, (_TARGET_TILE_BYTES // row_bytes) // sub * sub)
    if rows >= B:
        bb, Bp = B, B                     # full extent: layout-legal, no padding
    else:
        bb = rows
        for cand in range(rows, sub - 1, -sub):   # prefer bb | B: no pad / slice copy
            if B % cand == 0:
                bb = cand
                break
        Bp = -(-B // bb) * bb

    # ---- megacore / pipelining (v7x only) ------------------------------------
    # 2 TCs want >=2 steps each so DMA overlaps compute; on 1-TC chips (v5e/v6e)
    # the grid is a serial loop and forcing extra steps is pure overhead.
    if num_tc >= 2:
        for _ in range(8):
            n_steps = (-(-Bp // bb)) * (-(-C // ct))
            if n_steps >= 2 * num_tc:
                break
            if ct % 256 == 0:             # halve the channel tile first (stays a
                ct //= 2                  # multiple of 128 and a divisor of C)
            elif bb > sub:
                bb = max(sub, (bb // 2) // sub * sub)
                Bp = -(-B // bb) * bb
            else:
                break
    return bb, ct, Bp


def _pad_batch(a, Bp, value=0.0):
    if Bp == a.shape[0]:
        return a
    pad = [(0, Bp - a.shape[0])] + [(0, 0)] * (a.ndim - 1)
    return jnp.pad(a, pad, constant_values=value)


# ---------------------------------------------------------------------------
# Pallas wrapper
# ---------------------------------------------------------------------------
def _pallas_segment_reduce(x, op, mask=None, block_b=None, block_c=None):
    B, T, C = x.shape
    itemsize = jnp.dtype(x.dtype).itemsize
    vmem_cap, num_tc = _tpu_info()
    bb, ct, Bp = _choose_tiles(B, T, C, itemsize, num_tc)

    # optional user overrides (validated: sublane-/lane-aligned or full extent)
    sub = max(8, 32 // itemsize)
    if block_b is not None:
        block_b = int(block_b)
        bb = B if block_b >= B else max(sub, (block_b // sub) * sub)
        Bp = -(-B // bb) * bb
    if block_c is not None:
        block_c = int(block_c)
        if block_c >= C or C % 128 != 0:
            ct = C
        else:
            ct = max(128, (block_c // 128) * 128)
            while C % ct != 0:            # keep ct a divisor of C (terminates at 128)
                ct -= 128

    grid = (Bp // bb, C // ct)

    inputs = [_pad_batch(x, Bp)]
    in_specs = [pl.BlockSpec((bb, T, ct), lambda bi, ci: (bi, 0, ci))]

    if op == "masked_avg":
        m = mask.astype(jnp.float32)                    # (B, T)
        cnt = jnp.sum(m, axis=1, keepdims=True)         # (B, 1); tiny, once in XLA
        # TODO(synk): PyTorch asserts cleanframe[i].sum() > 0 per row; rows that
        #             violate it silently produce inf/nan here (no jit-safe assert).
        w = (m / cnt)[:, :, None]                       # (B, T, 1): mask & 1/count folded
        inputs.append(_pad_batch(w, Bp, value=0.0))
        in_specs.append(pl.BlockSpec((bb, T, 1), lambda bi, ci: (bi, 0, 0)))
        kernel = _masked_avg_kernel
    elif op == "avg":
        kernel = _avg_kernel
    elif op == "max":
        kernel = _max_kernel
    else:
        raise ValueError(op)

    # generation-aware VMEM budget: double-buffered blocks + in-kernel f32 temps
    x_tile = bb * T * ct * itemsize
    w_tile = bb * T * 4
    o_tile = bb * ct * itemsize
    f32_tmp = 2 * bb * T * ct * 4                      # x.astype(f32) and x*w temporaries
    need = 2 * (x_tile + w_tile + o_tile) + f32_tmp
    vmem_limit = int(min(max(2 * need, 32 << 20), int(0.75 * vmem_cap)))

    out = pl.pallas_call(
        kernel,
        out_shape=jax.ShapeDtypeStruct((Bp, C), x.dtype),    # lane-dense 2-D output
        grid=grid,
        in_specs=in_specs,
        out_specs=pl.BlockSpec((bb, ct), lambda bi, ci: (bi, ci)),
        compiler_params=pltpu.CompilerParams(
            dimension_semantics=("parallel", "parallel"),
            vmem_limit_bytes=vmem_limit),
    )(*inputs)
    out = out if Bp == B else out[:B]
    return out.reshape(B, 1, C)


# ---------------------------------------------------------------------------
# Public module equivalent
# ---------------------------------------------------------------------------
def consensus_module(x, cleanframe=None, consensus_type="avg", dim=1,
                     use_pallas=None, block_b=None, block_c=None):
    """JAX/Pallas equivalent of ConsensusModule(consensus_type, dim)(x, cleanframe)."""
    if consensus_type == "rnn":
        consensus_type = "identity"

    if use_pallas is None:
        # tiny problems: pallas launch + pad/slice overhead dwarfs a fused XLA reduce
        use_pallas = x.size * jnp.dtype(x.dtype).itemsize >= _SMALL_BYTES

    if cleanframe is not None:
        if consensus_type != "avg":
            raise NotImplementedError
        assert dim == 1, "kernel implements reduction over dim=1 (segments)"
        B, T = x.shape[0], x.shape[1]
        mask2d = cleanframe.reshape(B, T)
        if not use_pallas:
            m = mask2d.astype(jnp.float32)[:, :, None]
            return jnp.sum(x * m, axis=1, keepdims=True) / jnp.sum(m, axis=1, keepdims=True)
        return _pallas_segment_reduce(x, "masked_avg", mask=mask2d,
                                      block_b=block_b, block_c=block_c)

    if consensus_type == "avg":
        assert dim == 1
        if not use_pallas:
            return jnp.mean(x, axis=1, keepdims=True)
        return _pallas_segment_reduce(x, "avg", block_b=block_b, block_c=block_c)
    if consensus_type == "max":
        assert dim == 1
        if not use_pallas:
            return jnp.max(x, axis=1, keepdims=True)
        return _pallas_segment_reduce(x, "max", block_b=block_b, block_c=block_c)
    if consensus_type == "identity":
        return x
    return None


# ---------------------------------------------------------------------------
# Main
# ---------------------------------------------------------------------------
if __name__ == "__main__":
    key = jax.random.PRNGKey(0)
    B, T, C = 16, 8, 256   # batch, segments, class-score channels

    kx, km = jax.random.split(key)
    x = jax.random.normal(kx, (B, T, C), dtype=jnp.float32)

    # deterministic boolean cleanframe mask with at least one True per row
    cleanframe = jax.random.bernoulli(km, p=0.5, shape=(B, T))
    cleanframe = cleanframe.at[:, 0].set(True)

    m = cleanframe.astype(jnp.float32)[:, :, None]
    ref_masked = jnp.sum(x * m, axis=1, keepdims=True) / jnp.sum(m, axis=1, keepdims=True)

    # --- masked avg, Pallas, batch tiling only (grid 2x1) ---
    out_masked = consensus_module(x, cleanframe, "avg", dim=1,
                                  use_pallas=True, block_b=8)
    out_masked = jax.block_until_ready(out_masked)
    assert out_masked.shape == (B, 1, C)
    assert jnp.allclose(out_masked, ref_masked, atol=1e-5, rtol=1e-5)

    # --- masked avg, Pallas, batch + channel tiling (grid 2x2) ---
    out_masked2 = jax.block_until_ready(
        consensus_module(x, cleanframe, "avg", dim=1,
                         use_pallas=True, block_b=8, block_c=128))
    assert jnp.allclose(out_masked2, ref_masked, atol=1e-5, rtol=1e-5)

    # --- plain avg (Pallas, auto tiling) ---
    out_avg = jax.block_until_ready(consensus_module(x, None, "avg", use_pallas=True))
    assert jnp.allclose(out_avg, jnp.mean(x, axis=1, keepdims=True), atol=1e-5, rtol=1e-5)

    # --- max (Pallas, auto tiling) ---
    out_max = jax.block_until_ready(consensus_module(x, None, "max", use_pallas=True))
    assert jnp.allclose(out_max, jnp.max(x, axis=1, keepdims=True))

    # --- identity / rnn passthrough ---
    assert consensus_module(x, None, "identity").shape == x.shape
    assert consensus_module(x, None, "rnn").shape == x.shape

    # --- tiny-problem auto fallback (pure jnp path) ---
    xs = jax.random.normal(kx, (2, 8, 32), dtype=jnp.float32)
    out_small = jax.block_until_ready(consensus_module(xs, None, "avg"))
    assert jnp.allclose(out_small, jnp.mean(xs, axis=1, keepdims=True), atol=1e-5, rtol=1e-5)

    print("KERNEL_OK")
</pallas_src>

<mosaic_0001>
module attributes {stable_mosaic.version = 11 : i64} {
  func.func @_masked_avg_kernel(%arg0: i32, %arg1: i32, %arg2: memref<8x8x256xf32, #tpu.memory_space<vmem>>, %arg3: memref<8x8x1xf32, #tpu.memory_space<vmem>>, %arg4: memref<8x256xf32, #tpu.memory_space<vmem>>) attributes {dimension_semantics = [#tpu.dimension_semantics<parallel>, #tpu.dimension_semantics<parallel>], iteration_bounds = array<i64: 2, 1>, scalar_prefetch = 0 : i64, scratch_operands = 0 : i64, tpu.core_type = #tpu.core_type<tc>, window_params = [{transform_indices = @transform_0, window_bounds = array<i64: 8, 8, 256>}, {transform_indices = @transform_1, window_bounds = array<i64: 8, 8, 1>}, {transform_indices = @transform_2, window_bounds = array<i64: 8, 256>}]} {
    %c0 = arith.constant 0 : index
    %c0_0 = arith.constant 0 : index
    %c0_1 = arith.constant 0 : index
    %0 = vector.load %arg2[%c0, %c0_0, %c0_1] : memref<8x8x256xf32, #tpu.memory_space<vmem>>, vector<8x8x256xf32>
    %c0_2 = arith.constant 0 : index
    %c0_3 = arith.constant 0 : index
    %c0_4 = arith.constant 0 : index
    %1 = vector.load %arg3[%c0_2, %c0_3, %c0_4] : memref<8x8x1xf32, #tpu.memory_space<vmem>>, vector<8x8x1xf32>
    %2 = vector.broadcast %1 : vector<8x8x1xf32> to vector<8x8x256xf32>
    %3 = arith.mulf %0, %2 : vector<8x8x256xf32>
    %cst = arith.constant dense<0.000000e+00> : vector<8x256xf32>
    %4 = vector.multi_reduction <add>, %3, %cst [1] : vector<8x8x256xf32> to vector<8x256xf32>
    %c0_5 = arith.constant 0 : index
    %c0_6 = arith.constant 0 : index
    %5 = vector.load %arg4[%c0_5, %c0_6] : memref<8x256xf32, #tpu.memory_space<vmem>>, vector<8x256xf32>
    tpu.vector_store %arg4[%c0_5, %c0_6], %4 {strides = array<i32>} : memref<8x256xf32, #tpu.memory_space<vmem>>, vector<8x256xf32>,
    return
  }
  func.func @transform_0(%arg0: i32, %arg1: i32) -> (i32, i32, i32) {
    %c0_i32 = arith.constant 0 : i32
    %c0_i32_0 = arith.constant 0 : i32
    return %arg0, %c0_i32, %arg1 : i32, i32, i32
  }
  func.func @transform_1(%arg0: i32, %arg1: i32) -> (i32, i32, i32) {
    %c0_i32 = arith.constant 0 : i32
    %c0_i32_0 = arith.constant 0 : i32
    %c0_i32_1 = arith.constant 0 : i32
    return %arg0, %c0_i32, %c0_i32_0 : i32, i32, i32
  }
  func.func @transform_2(%arg0: i32, %arg1: i32) -> (i32, i32) {
    %c0_i32 = arith.constant 0 : i32
    return %arg0, %arg1 : i32, i32
  }
}

</mosaic_0001>

<bundles_post_ra>
// kernel: tpu_custom_call.1
= control target key start
LH: loop header
LB: loop body
LE: loop exit
PB: predicated region body
PF: predicated region fallthrough
CT: control target
= control target key end

     0   :  { %7 = vsyncpa [#allocation3], 0  ;;  %s929_s0 = inlined_call_operand.hbm [shape: f32[16,8,256], index: 0, kind: input, shape index: {}]   ;;  %s930_s1 = inlined_call_operand.vmem [shape: f32[16,8,1], index: 1, kind: input, shape index: {}]   ;;  %s931_s2 = inlined_call_operand.hbm [shape: f32[16,256], index: 2, kind: output, shape index: {}]  }
   0x1   :  { %9 = vsyncpa [#allocation3 + $0x1], 0 }
   0x2   :  { %10 = vsyncpa [#allocation4], 0 }
   0x3   :  { %12 = vsyncpa [#allocation4 + $0x1], 0  ;;  %s754_s9 = smov 0   ;;  %s756_s10 = smov 0  }
   0x4   :  { %s758_s11 = smov 0   ;;  %s760_s12 = smov 0  }
   0x5   :  { %s762_s13 = smov 0   ;;  %s764_s14 = smov 0  }
   0x6 LB: > { %s536_s15 = sadd.s32 4294967295, %s732_s14   ;;  %s537_s16 = sadd.s32 4294967294, %s732_s14   ;;  %s732_s14 = sphi %s764_s14, %s18_s14   ;;  %s728_s13 = sphi %s762_s13, %s942_s13   ;;  %s724_s12 = sphi %s760_s12, %s941_s12   ;;  %s720_s11 = sphi %s758_s11, %s940_s11   ;;  %s716_s10 = sphi %s756_s10, %s939_s10   ;;  %s712_s9 = sphi %s754_s9, %s938_s9  }
   0x7   : > { %s30_s17 = sadd.s32 1, %s728_s13  ;;  %s39_s18 = sadd.s32 1, %s720_s11 }
   0x8   : > { %p32_p0 = scmp.ge.s32.totalorder %s30_s17, 2  ;;  %p46_p1 = scmp.ne.s32.totalorder %s720_s11, %s716_s10 }
   0x9   : > { %p47_p2 = scmp.eq.s32.totalorder %s732_s14, 0  ;;  %p52_p3 = scmp.ne.s32.totalorder %s716_s10, %s712_s9 }
   0xa   : > { %s944_s17 = smov (%p32_p0, %s30_s17), 0  ;;  %p53_p5 = scmp.eq.s32.totalorder %s536_s15, 0 }
   0xb   : > { %p795_p4 = por %p47_p2, %p46_p1  ;;  %s34_s20 = ssub.s32 %s728_s13, %s944_s17 }
   0xc   : > { %p104_p6 = scmp.eq.s32.totalorder %s536_s15, 1  ;;  %p37_p7 = scmp.eq.s32.totalorder %s34_s20, 0 }
   0xd   : > { %p801_p8 = por %p53_p5, %p52_p3  ;;  %p110_p10 = scmp.eq.s32.totalorder %s537_s16, 1 }
   0xe   : > { %p805_p9 = por %p104_p6, %p46_p1  ;;  %p569_p13 = scmp.lt.s32.totalorder %s732_s14, 2 }
   0xf   : > { %s810_s23 = scalar_select %p37_p7, %s720_s11, %s39_s18  }
  0x10   : > { %p812_p11 = por %p110_p10, %p52_p3  ;;  %s130_s25 = sand.u32 1, %s720_s11  }
  0x11   : > { %s540_s26 = sshll.u32 %s130_s25, 7  ;;  %s555_s27 = sshll.u32 %s728_s13, 11 }
  0x12   : > { %s143_s30 = scalar_lea.hbm %s929_s0, %s555_s27  ;;  %s134_s3 = scalar_lea.vmem [#allocation2], %s540_s26 }
  0x13   : > { %s144_s4 = sshll.u32 %s134_s3, 4  ;;  %p825_p0 = pnand %p569_p13, %p795_p4  ;;  %s145_s4 = int_to_ptr.vmem [resolvable:$true] %s144_s4 }
  0x14   : > { %p544_p1 = scmp.ge.s32.totalorder %s732_s14, 1  ;;  %s131_s6 = scalar_lea.sflag [#allocation3], %s130_s25 }
  0x15   : > { %p626_p2 = pneg %p825_p0  ;;  %s637_s7 = scalar_lea.vmem %s145_s4, 2048 }
  0x16   : > { %p638_p3 = scmp.ne.s32.totalorder %s145_s4, %s637_s7  ;;  %s734_s8 = smov [#allocation2]  }
  0x17   : > { %s642_s15 = sshll.u32 %s734_s8, 4  ;;  %s643_s15 = int_to_ptr.vmem [resolvable:$false] %s642_s15 }
  0x18   : > { %p640_p5 = pnand %p638_p3, %p626_p2  ;;  %s644_s16 = scalar_lea.vmem %s643_s15, 4096 }
  0x19   : > { %p645_p7 = scmp.lt.s32.totalorder %s145_s4, %s643_s15  ;;  %p646_p10 = scmp.lt.s32.totalorder %s644_s16, %s637_s7 }
  0x1a   : > { %p641_p6 = pneg %p640_p5 }
  0x1b   : > { %p647_p12 = por %p646_p10, %p645_p7 }
  0x1d   : > { %p648_p4 = pnand %p647_p12, %p641_p6 }
  0x1f   : > { %651 = shalt.err (!%p648_p4)
}
  0x20   : > { %s735_s18 = smov 256   ;;  %s736_s19 = smov 16  }
  0x21   : > { %564 = dma.hbm_to_vmem [thread:$0]  (!%p825_p0), %s143_s30, 2048, %s145_s4, %s131_s6, %s735_s18, %s735_s18, %s736_s19  }
  0x22   : > { %p161_p13 = scmp.lt.s32.totalorder %s732_s14, 3 }
  0x24   : > { %p162_p2 = pnand %p544_p1, %p161_p13 }
  0x25   : > { %s838_s20 = sand.u32 (!%p162_p2), 1, %s716_s10  }
  0x26   : > { %165 = sbr.rel (%p162_p2) target bundleno = 225 (0xe1), region = 28  ;;  %s545_s25 = sshll.u32 (!%p162_p2), %s838_s20, 7 }
  0x27   : > { %s168_s26 = scalar_lea.sflag (!%p162_p2), [#allocation3], %s838_s20  ;;  %s842_s27 = scalar_lea.vmem (!%p162_p2), [#allocation2], %s545_s25 }
  0x2b   : > { %703 = dma.done.wait (%p801_p8), %s168_s26, 2048  }
  0x2c   : > { %705 = vsyncadd (%p801_p8), %s168_s26, 4294965248  ;;  %s547_s28 = sshll.u32 %s724_s12, 3  ;;  %v737_v0 = vmov 0   ;;  %v210_v9 = vld [vmem:[%s842_s27 + $0x20] sm:$0xff]  ;;  %v211_v10 = vld [vmem:[%s842_s27 + $0x28] sm:$0xff]  ;;  %vm398_vm0 = vcmask 1041409  }
  0x2d   : > { %623 = vset.pattern.permute.xlu1 %v737_v0  ;;  %622 = vset.pattern.permute.xlu0 %v737_v0  ;;  %p200_p12 = scmp.lt.s32.totalorder %s547_s28, 15  ;;  %v206_v11 = vld [vmem:[%s842_s27] sm:$0xff]  ;;  %v207_v12 = vld [vmem:[%s842_s27 + $0x8] sm:$0xff]  ;;  %v212_v19 = vld [vmem:[%s842_s27 + $0x30] sm:$0xff]  ;;  %vm400_vm1 = vcmask 1042434   ;;  %vm402_vm2 = vcmask 1043459  }
  0x2e   : > { %v213_v20 = vld [vmem:[%s842_s27 + $0x38] sm:$0xff]  ;;  %v208_v25 = vld [vmem:[%s842_s27 + $0x10] sm:$0xff]  ;;  %v214_v59 = vld [vmem:[%s842_s27 + $0x40] sm:$0xff]  ;;  %vm404_vm3 = vcmask 1044484   ;;  %s546_s21 = sshll.u32 %s838_s20, 4  ;;  %vm406_vm4 = vcmask 1045509  }
  0x2f   : > { %s946_s28 = smov (!%p200_p12, %s547_s28), 15  ;;  %v209_v26 = vld [vmem:[%s842_s27 + $0x18] sm:$0xff]  ;;  %v216_v52 = vld [vmem:[%s842_s27 + $0x50] sm:$0xff]  ;;  %v215_v60 = vld [vmem:[%s842_s27 + $0x48] sm:$0xff]  ;;  %vm408_vm5 = vcmask 1046534   ;;  %s556_s5 = sshll.u32 %s724_s12, 8 }
  0x30   : > { %s548_s29 = sshll.u32 %s946_s28, 3  ;;  %v217_v57 = vld [vmem:[%s842_s27 + $0x58] sm:$0xff]  ;;  %s196_s6 = scalar_lea.vmem [#allocation5], %s546_s21  ;;  %vm410_vm6 = vcmask 1047559  }
  0x31   : > { %s203_s4 = scalar_lea.vmem %s930_s1, %s548_s29  ;;  %s440_s7 = sshll.u32 %s196_s6, 4  ;;  %s883_s7 = int_to_ptr.vmem [resolvable:$true] %s440_s7 }
  0x32   : > { %v224_v1 = vld [vmem:[%s203_s4 + $0x10] sm:$0xff]  ;;  %v222_v2 = vld [vmem:[%s203_s4] sm:$0xff]  ;;  %v225_v3 = vld [vmem:[%s203_s4 + $0x18] sm:$0xff]  ;;  %s881_s16 = scalar_lea.hbm %s931_s2, %s556_s5  ;;  %s424_s12 = scalar_lea.sflag [#allocation4], %s838_s20 }
  0x33   : > { %242 = vperm.xlu1 %623, %v224_v1   ;;  %232 = vperm.xlu0 %622, %v222_v2   ;;  %v223_v4 = vld [vmem:[%s203_s4 + $0x8] sm:$0xff]  ;;  %v226_v6 = vld [vmem:[%s203_s4 + $0x20] sm:$0xff]  ;;  %v229_v7 = vld [vmem:[%s203_s4 + $0x38] sm:$0xff]  ;;  %s652_s18 = scalar_lea.vmem %s883_s7, 256  ;;  %s738_s19 = smov [#allocation5]  }
  0x34   : > { %v227_v5 = vld [vmem:[%s203_s4 + $0x28] sm:$0xff]  ;;  %v228_v8 = vld [vmem:[%s203_s4 + $0x30] sm:$0xff]  ;;  %p653_p8 = scmp.ne.s32.totalorder %s883_s7, %s652_s18  ;;  %s656_s25 = sshll.u32 %s738_s19, 4  ;;  %s657_s25 = int_to_ptr.vmem [resolvable:$false] %s656_s25 }
  0x35   : > { %s658_s26 = scalar_lea.vmem %s657_s25, 512  ;;  %p659_p3 = scmp.lt.s32.totalorder %s883_s7, %s657_s25 }
  0x36   : > { %p654_p0 = pnand %p653_p8, %p805_p9  ;;  %p660_p5 = scmp.lt.s32.totalorder %s658_s26, %s652_s18 }
  0x37   : > { %247 = vperm.xlu1 %623, %v225_v3   ;;  %237 = vperm.xlu0 %622, %v223_v4  }
  0x38   : > { %p655_p1 = pneg %p654_p0  ;;  %p661_p6 = por %p660_p5, %p659_p3 }
  0x3a   : > { %p662_p7 = pnand %p661_p6, %p655_p1 }
  0x3b   : > { %257 = vperm.xlu1 %623, %v227_v5   ;;  %252 = vperm.xlu0 %622, %v226_v6  }
  0x3f   : > { %267 = vperm.xlu1 %623, %v229_v7   ;;  %262 = vperm.xlu0 %622, %v228_v8  }
  0xae   : > { %v243_v13 = vpop.permute.xlu1 %242  ;;  %v233_v14 = vpop.permute.xlu0 %232 }
  0xaf   : > { %v274_v15 = vmul.f32 %v243_v13, %v210_v9  ;;  %v275_v16 = vmul.f32 %v243_v13, %v211_v10  ;;  %v270_v17 = vmul.f32 %v233_v14, %v206_v11  ;;  %v271_v18 = vmul.f32 %v233_v14, %v207_v12 }
  0xb1   : > { %v310_v21 = vrot.slane %v274_v15, 4  ;;  %v316_v22 = vrot.slane %v275_v16, 4  ;;  %v286_v23 = vrot.slane %v270_v17, 4  ;;  %v292_v24 = vrot.slane %v271_v18, 4 }
  0xb2   : > { %v248_v27 = vpop.permute.xlu1 %247  ;;  %v238_v28 = vpop.permute.xlu0 %237 }
  0xb3   : > { %v311_v29 = vadd.f32 %v310_v21, %v274_v15  ;;  %v317_v30 = vadd.f32 %v316_v22, %v275_v16  ;;  %v287_v31 = vadd.f32 %v286_v23, %v270_v17  ;;  %v293_v32 = vadd.f32 %v292_v24, %v271_v18  ;;  %v220_v16 = vld [vmem:[%s842_s27 + $0x70] sm:$0xff]  ;;  %v221_v17 = vld [vmem:[%s842_s27 + $0x78] sm:$0xff] }
  0xb4   : > { %v276_v33 = vmul.f32 %v248_v27, %v212_v19  ;;  %v277_v34 = vmul.f32 %v248_v27, %v213_v20  ;;  %v272_v35 = vmul.f32 %v238_v28, %v208_v25  ;;  %v273_v36 = vmul.f32 %v238_v28, %v209_v26 }
  0xb5   : > { %v312_v37 = vrot.slane %v311_v29, 2  ;;  %v318_v38 = vrot.slane %v317_v30, 2  ;;  %v288_v39 = vrot.slane %v287_v31, 2  ;;  %v294_v40 = vrot.slane %v293_v32, 2 }
  0xb6   : > { %v322_v41 = vrot.slane %v276_v33, 4  ;;  %v328_v42 = vrot.slane %v277_v34, 4  ;;  %v298_v43 = vrot.slane %v272_v35, 4  ;;  %v304_v44 = vrot.slane %v273_v36, 4  ;;  %v258_v51 = vpop.permute.xlu1 %257  ;;  %v253_v58 = vpop.permute.xlu0 %252 }
  0xb7   : > { %v313_v45 = vadd.f32 %v312_v37, %v311_v29  ;;  %v319_v46 = vadd.f32 %v318_v38, %v317_v30  ;;  %v289_v53 = vadd.f32 %v288_v39, %v287_v31  ;;  %v295_v54 = vadd.f32 %v294_v40, %v293_v32 }
  0xb8   : > { %v323_v47 = vadd.f32 %v322_v41, %v276_v33  ;;  %v329_v48 = vadd.f32 %v328_v42, %v277_v34  ;;  %v299_v49 = vadd.f32 %v298_v43, %v272_v35  ;;  %v305_v50 = vadd.f32 %v304_v44, %v273_v36  ;;  %v218_v35 = vld [vmem:[%s842_s27 + $0x60] sm:$0xff]  ;;  %v219_v36 = vld [vmem:[%s842_s27 + $0x68] sm:$0xff] }
  0xb9   : > { %v314_v61 = vrot.slane %v313_v45, 1  ;;  %v320_v62 = vrot.slane %v319_v46, 1  ;;  %v280_v3 = vmul.f32 %v258_v51, %v216_v52  ;;  %v281_v4 = vmul.f32 %v258_v51, %v217_v57 }
  0xba   : > { %v300_v55 = vrot.slane %v299_v49, 2  ;;  %v306_v56 = vrot.slane %v305_v50, 2  ;;  %v324_v63 = vrot.slane %v323_v47, 2  ;;  %v330_v0 = vrot.slane %v329_v48, 2  ;;  %v268_v15 = vpop.permute.xlu1 %267  ;;  %v263_v34 = vpop.permute.xlu0 %262 }
  0xbb   : > { %v278_v5 = vmul.f32 %v253_v58, %v214_v59  ;;  %v279_v6 = vmul.f32 %v253_v58, %v215_v60  ;;  %v290_v7 = vrot.slane %v289_v53, 1  ;;  %v296_v8 = vrot.slane %v295_v54, 1 }
  0xbc   : > { %v301_v1 = vadd.f32 %v300_v55, %v299_v49  ;;  %v307_v2 = vadd.f32 %v306_v56, %v305_v50  ;;  %v346_v11 = vrot.slane %v280_v3, 4  ;;  %v352_v12 = vrot.slane %v281_v4, 4 }
  0xbd   : > { %v334_v13 = vrot.slane %v278_v5, 4  ;;  %v340_v14 = vrot.slane %v279_v6, 4  ;;  %v325_v18 = vadd.f32 %v324_v63, %v323_v47  ;;  %v331_v19 = vadd.f32 %v330_v0, %v329_v48 }
  0xbe   : > { %v302_v9 = vrot.slane %v301_v1, 1  ;;  %v308_v10 = vrot.slane %v307_v2, 1  ;;  %v347_v22 = vadd.f32 %v346_v11, %v280_v3  ;;  %v353_v23 = vadd.f32 %v352_v12, %v281_v4 }
  0xbf   : > { %v335_v24 = vadd.f32 %v334_v13, %v278_v5  ;;  %v341_v25 = vadd.f32 %v340_v14, %v279_v6  ;;  %v315_v26 = vadd.f32 %v314_v61, %v313_v45  ;;  %v321_v27 = vadd.f32 %v320_v62, %v319_v46 }
  0xc0   : > { %v303_v20 = vadd.f32 %v302_v9, %v301_v1  ;;  %v309_v21 = vadd.f32 %v308_v10, %v307_v2  ;;  %v284_v28 = vmul.f32 %v268_v15, %v220_v16  ;;  %v285_v29 = vmul.f32 %v268_v15, %v221_v17 }
  0xc1   : > { %v291_v30 = vadd.f32 %v290_v7, %v289_v53  ;;  %v297_v31 = vadd.f32 %v296_v8, %v295_v54  ;;  %v348_v32 = vrot.slane %v347_v22, 2  ;;  %v354_v33 = vrot.slane %v353_v23, 2 }
  0xc2   : > { %v326_v37 = vrot.slane %v325_v18, 1  ;;  %v332_v38 = vrot.slane %v331_v19, 1  ;;  %v336_v39 = vrot.slane %v335_v24, 2  ;;  %v342_v40 = vrot.slane %v341_v25, 2 }
  0xc3   : > { %v399_v41 = vsel %vm398_vm0, %v303_v20, %v291_v30  ;;  %v412_v42 = vsel %vm398_vm0, %v309_v21, %v297_v31  ;;  %v370_v43 = vrot.slane %v284_v28, 4  ;;  %v376_v44 = vrot.slane %v285_v29, 4 }
  0xc4   : > { %v337_v45 = vadd.f32 %v336_v39, %v335_v24  ;;  %v343_v46 = vadd.f32 %v342_v40, %v341_v25  ;;  %v282_v47 = vmul.f32 %v263_v34, %v218_v35  ;;  %v283_v48 = vmul.f32 %v263_v34, %v219_v36 }
  0xc5   : > { %v349_v49 = vadd.f32 %v348_v32, %v347_v22  ;;  %v355_v50 = vadd.f32 %v354_v33, %v353_v23  ;;  %v371_v51 = vadd.f32 %v370_v43, %v284_v28  ;;  %v377_v52 = vadd.f32 %v376_v44, %v285_v29 }
  0xc6   : > { %v338_v53 = vrot.slane %v337_v45, 1  ;;  %v344_v54 = vrot.slane %v343_v46, 1  ;;  %v358_v55 = vrot.slane %v282_v47, 4  ;;  %v364_v56 = vrot.slane %v283_v48, 4 }
  0xc7   : > { %v327_v57 = vadd.f32 %v326_v37, %v325_v18  ;;  %v333_v58 = vadd.f32 %v332_v38, %v331_v19  ;;  %v372_v59 = vrot.slane %v371_v51, 2  ;;  %v378_v60 = vrot.slane %v377_v52, 2 }
  0xc8   : > { %v401_v61 = vsel %vm400_vm1, %v315_v26, %v399_v41  ;;  %v413_v62 = vsel %vm400_vm1, %v321_v27, %v412_v42  ;;  %v359_v63 = vadd.f32 %v358_v55, %v282_v47  ;;  %v365_v0 = vadd.f32 %v364_v56, %v283_v48 }
  0xc9   : > { %v350_v1 = vrot.slane %v349_v49, 1  ;;  %v356_v2 = vrot.slane %v355_v50, 1  ;;  %v373_v3 = vadd.f32 %v372_v59, %v371_v51  ;;  %v379_v4 = vadd.f32 %v378_v60, %v377_v52 }
  0xca   : > { %v339_v5 = vadd.f32 %v338_v53, %v337_v45  ;;  %v345_v6 = vadd.f32 %v344_v54, %v343_v46  ;;  %v360_v7 = vrot.slane %v359_v63, 2  ;;  %v366_v8 = vrot.slane %v365_v0, 2 }
  0xcb   : > { %v403_v9 = vsel %vm402_vm2, %v327_v57, %v401_v61  ;;  %v414_v10 = vsel %vm402_vm2, %v333_v58, %v413_v62  ;;  %v374_v11 = vrot.slane %v373_v3, 1  ;;  %v380_v12 = vrot.slane %v379_v4, 1 }
  0xcc   : > { %v361_v13 = vadd.f32 %v360_v7, %v359_v63  ;;  %v367_v14 = vadd.f32 %v366_v8, %v365_v0  ;;  %v351_v15 = vadd.f32 %v350_v1, %v349_v49  ;;  %v357_v16 = vadd.f32 %v356_v2, %v355_v50 }
  0xcd   : > { %v405_v17 = vsel %vm404_vm3, %v339_v5, %v403_v9  ;;  %v415_v18 = vsel %vm404_vm3, %v345_v6, %v414_v10  ;;  %v375_v21 = vadd.f32 %v374_v11, %v373_v3  ;;  %v381_v22 = vadd.f32 %v380_v12, %v379_v4 }
  0xce   : > { %v362_v19 = vrot.slane %v361_v13, 1  ;;  %v368_v20 = vrot.slane %v367_v14, 1  ;;  %v407_v25 = vsel %vm406_vm4, %v351_v15, %v405_v17  ;;  %v416_v26 = vsel %vm406_vm4, %v357_v16, %v415_v18 }
  0xd0   : > { %v363_v23 = vadd.f32 %v362_v19, %v361_v13  ;;  %v369_v24 = vadd.f32 %v368_v20, %v367_v14 }
  0xd2   : > { %v409_v27 = vsel %vm408_vm5, %v363_v23, %v407_v25  ;;  %v417_v28 = vsel %vm408_vm5, %v369_v24, %v416_v26 }
  0xd3   : > { %v411_v29 = vsel %vm410_vm6, %v375_v21, %v409_v27  ;;  %v418_v30 = vsel %vm410_vm6, %v381_v22, %v417_v28 }
  0xd4   : > { %421 = vst [vmem:[%s196_s6] sm:$0xff] %v411_v29  ;;  %422 = vst [vmem:[%s196_s6 + $0x8] sm:$0xff] %v418_v30 }
  0xd5   : > { %665 = shalt.err (!%p662_p7)
}
  0xd6   : > { %s666_s27 = scalar_lea.hbm %s881_s16, 256  ;;  %s670_s29 = scalar_lea.hbm %s931_s2, 512 }
  0xd7   : > { %p667_p10 = scmp.ne.s32.totalorder %s881_s16, %s666_s27  ;;  %p671_p2 = scmp.lt.s32.totalorder %s881_s16, %s931_s2 }
  0xd8   : > { %p672_p12 = scmp.lt.s32.totalorder %s670_s29, %s666_s27 }
  0xd9   : > { %p668_p4 = pnand %p667_p10, %p805_p9 }
  0xda   : > { %p673_p8 = por %p672_p12, %p671_p2 }
  0xdb   : > { %p669_p13 = pneg %p668_p4 }
  0xdd   : > { %p674_p0 = pnand %p673_p8, %p669_p13 }
  0xdf   : > { %677 = shalt.err (!%p674_p0)
}
  0xe0   : > { %559 = dma.vmem_to_hbm [thread:$0]  (%p805_p9), %s883_s7, 256, %s881_s16, %s424_s12  }
  0xe1 PF: > { %s452_s4 = sand.u32 1, %s712_s9   ;;  %p937_p1 = scmp.ge.s32.totalorder %s732_s14, 2 }
  0xe2   : > { %s453_s21 = scalar_lea.sflag [#allocation4], %s452_s4 }
  0xe3   : > { %p566_p3 = pnand %p937_p1, %p812_p11 }
  0xe5   : > { %p567_p5 = pneg %p566_p3 }
  0xe7   : > { %707 = dma.done.wait (%p567_p5), %s453_s21, 256  }
  0xe8   : > { %709 = vsyncadd (%p567_p5), %s453_s21, 4294967040  ;;  %s18_s14 = sadd.s32 1, %s732_s14   ;;  %s938_s9 = smov %s716_s10 }
  0xe9   : > { %p15_p6 = scmp.ge.s32.totalorder %s18_s14, 4   ;;  %s939_s10 = smov %s720_s11 }
  0xea   : > { %s940_s11 = smov %s810_s23  ;;  %s941_s12 = smov %s728_s13 }
  0xeb   : > { %s942_s13 = smov %s944_s17  ;;  %17 = sbr.rel (!%p15_p6) target bundleno = 6 (0x6), region = 76 }
  0xf0   :  { %458 = vsyncpa [#allocation3], 1 }
  0xf1   :  { %460 = vsyncpa [#allocation3 + $0x1], 1 }
  0xf2   :  { %461 = vsyncpa [#allocation4], 1 }
  0xf3   :  { %463 = vsyncpa [#allocation4 + $0x1], 1 }

</bundles_post_ra>
